<compile_context>
chip_gen: v7x
topology: tpu7x:2x2x1
jax: 0.10.0
libtpu: 0.0.40
codegen_flags: <defaults>
</compile_context>

<pallas_src>
import jax
import jax.numpy as jnp
from jax.experimental import pallas as pl
from jax.experimental.pallas import tpu as pltpu

_LANE = 128


def _denorm_kernel(x_ref, o_ref):
    # (x + 1) / 2  -- pure elementwise VPU op; multiply by 0.5 instead of
    # dividing (bit-identical for binary floats, avoids a divide).  Weak-typed
    # Python constants preserve bf16/f16 input dtypes.
    o_ref[...] = (x_ref[...] + 1.0) * 0.5


def _denorm_ref(x):
    """Plain fused-XLA fallback: one read + one write, handles any shape."""
    return (x + 1.0) * 0.5


def _ceil_div(a, b):
    return -(-a // b)


def _choose_tiling(total, itemsize, target_block_bytes, max_cols):
    """Copy-free lane-dense slab (rows, cols) and block height.

    Requires ``total % 128 == 0``.  Returns (rows, cols, block_rows).
    """
    # Sublane granularity: 8 rows for 32-bit, 16 for 16-bit, 32 for 8-bit
    # (keeps packed vregs full and row stores unmasked).
    sublane = 8 * max(1, 4 // itemsize)

    # Widest power-of-two multiple of 128 columns that (a) divides `total`
    # exactly (so the flatten+reshape is a free view — no pad copy) and
    # (b) leaves at least `sublane` rows.  Wide rows => long contiguous DMA
    # bursts and fully lane-dense, unmasked stores.
    cols = _LANE
    while (cols * 2 <= max_cols
           and total % (cols * 2) == 0
           and total // (cols * 2) >= sublane):
        cols *= 2
    rows = total // cols

    if rows <= sublane:
        # Tiny slab: single full-array block (block dims equal full dims, so
        # the (8,128) divisibility rule is satisfied regardless of size).
        return rows, cols, rows

    row_bytes = cols * itemsize
    total_bytes = rows * row_bytes
    min_block_bytes = 512 << 10   # floor: amortize ~0.35 us per-step overhead

    # Pick the grid step count first:
    #   * enough steps that each block is ~target_block_bytes,
    #   * at least 8 when the data allows (v7x: two TensorCores share the
    #     "parallel" axis and the pipeline needs a few steps to prime),
    #   * never so many that blocks drop below ~512 KiB,
    #   * always an even count (>1) so the two v7x TCs get balanced work.
    steps = max(1, _ceil_div(total_bytes, target_block_bytes))
    steps = min(max(steps, 8), max(1, total_bytes // min_block_bytes))
    steps = max(1, min(steps, rows // sublane))
    if steps > 1 and steps % 2:
        steps += 1

    block_rows = _ceil_div(_ceil_div(rows, steps), sublane) * sublane
    block_rows = min(max(block_rows, sublane), rows)

    # Sublane rounding can leave an odd actual step count; try one notch
    # smaller block to even it out for v7x (harmless on v5e/v6e).
    grid = _ceil_div(rows, block_rows)
    if grid > 1 and grid % 2:
        alt = max(sublane, block_rows - sublane)
        if alt != block_rows and _ceil_div(rows, alt) % 2 == 0:
            block_rows = alt

    return rows, cols, block_rows


def denormalize_samples(samples: jax.Array, *,
                        target_block_bytes: int = 4 << 20,
                        max_cols: int = 4096,
                        min_pallas_bytes: int = 2 << 20,
                        vmem_limit_bytes: int = 40 << 20) -> jax.Array:
    """(samples + 1.0) / 2.0 — Pallas TPU kernel with copy-free tiling.

    Large, 128-aligned floating tensors stream through a lane-dense Pallas
    kernel (pure HBM-bandwidth-bound elementwise).  Small tensors, ragged
    element counts and non-float dtypes take a plain fused-XLA path, which
    for this trivial op is already at the HBM roofline and avoids any
    pad / slice / concat traffic.
    """
    dtype = samples.dtype
    itemsize = jnp.dtype(dtype).itemsize
    total = samples.size
    nbytes = total * itemsize

    if (not jnp.issubdtype(dtype, jnp.floating)   # guard integer inputs
            or nbytes < min_pallas_bytes          # tiny: launch cost dominates
            or total % _LANE != 0):               # ragged: copy-free reshape impossible
        return _denorm_ref(samples)

    rows, cols, block_rows = _choose_tiling(
        total, itemsize, target_block_bytes, max_cols)

    x2d = samples.reshape(rows, cols)             # contiguous reshape: free view

    out2d = pl.pallas_call(
        _denorm_kernel,
        out_shape=jax.ShapeDtypeStruct((rows, cols), dtype),
        grid_spec=pltpu.PrefetchScalarGridSpec(
            num_scalar_prefetch=0,
            grid=(pl.cdiv(rows, block_rows),),
            in_specs=[pl.BlockSpec((block_rows, cols), lambda i: (i, 0))],
            out_specs=pl.BlockSpec((block_rows, cols), lambda i: (i, 0)),
        ),
        compiler_params=pltpu.CompilerParams(
            dimension_semantics=("parallel",),
            # Explicit scoped-VMEM budget: covers 2-in + 2-out double buffers
            # (~16 MiB at 4 MiB blocks) with headroom, above v5e's 16 MiB
            # default, and <= ~40 MiB so v7x's 64 MiB physical VMEM per TC
            # keeps slack.
            vmem_limit_bytes=vmem_limit_bytes,
        ),
        # NOTE: no input_output_aliases — the input is a reshape view of a
        # non-donated caller argument, so aliasing would force XLA to insert
        # a defensive full-tensor copy; dropping it costs no bandwidth.
    )(x2d)

    return out2d.reshape(samples.shape)


if __name__ == "__main__":
    key = jax.random.PRNGKey(0)
    k0, k1, k2 = jax.random.split(key, 3)

    # Case 1: realistic small NCHW sample batch (as produced by get_samples()
    # subclasses): batch=2, channels=4, spatial=16x16 -> small-tensor fast path.
    s1 = jax.random.uniform(k0, (2, 4, 16, 16), jnp.float32, -1.0, 1.0)
    r1 = (s1 + 1.0) / 2.0
    o1 = jax.block_until_ready(denormalize_samples(s1))
    assert o1.shape == s1.shape and o1.dtype == s1.dtype
    assert jnp.allclose(o1, r1, atol=1e-6, rtol=1e-6)

    # Case 2: same small, 128-aligned batch forced through the Pallas path
    # (exercises the kernel itself on a single full-array block).
    o2 = jax.block_until_ready(denormalize_samples(s1, min_pallas_bytes=0))
    assert o2.shape == s1.shape and o2.dtype == s1.dtype
    assert jnp.allclose(o2, r1, atol=1e-6, rtol=1e-6)

    # Case 3: larger aligned batch -> Pallas path with a multi-step, even,
    # balanced "parallel" grid (16*3*128*128 f32 = 3 MiB, grid = 6).
    s3 = jax.random.uniform(k1, (16, 3, 128, 128), jnp.float32, -1.0, 1.0)
    r3 = (s3 + 1.0) / 2.0
    o3 = jax.block_until_ready(denormalize_samples(s3))
    assert o3.shape == s3.shape and o3.dtype == s3.dtype
    assert jnp.allclose(o3, r3, atol=1e-6, rtol=1e-6)

    # Case 4: ragged 3-channel shape -> copy-free jnp fallback (no pad/slice).
    s4 = jax.random.uniform(k2, (2, 3, 15, 17), jnp.float32, -1.0, 1.0)
    r4 = (s4 + 1.0) / 2.0
    o4 = jax.block_until_ready(denormalize_samples(s4))
    assert o4.shape == s4.shape
    assert jnp.allclose(o4, r4, atol=1e-6, rtol=1e-6)

    print("KERNEL_OK")
</pallas_src>

<mosaic_0001>
module attributes {stable_mosaic.version = 11 : i64} {
  func.func @_denorm_kernel(%arg0: i32, %arg1: memref<8x256xf32, #tpu.memory_space<vmem>>, %arg2: memref<8x256xf32, #tpu.memory_space<vmem>>) attributes {dimension_semantics = [#tpu.dimension_semantics<parallel>], iteration_bounds = array<i64: 1>, scalar_prefetch = 0 : i64, scratch_operands = 0 : i64, tpu.core_type = #tpu.core_type<tc>, window_params = [{transform_indices = @transform_0, window_bounds = array<i64: 8, 256>}, {transform_indices = @transform_1, window_bounds = array<i64: 8, 256>}]} {
    %c0 = arith.constant 0 : index
    %c0_0 = arith.constant 0 : index
    %0 = vector.load %arg1[%c0, %c0_0] : memref<8x256xf32, #tpu.memory_space<vmem>>, vector<8x256xf32>
    %cst = arith.constant 1.000000e+00 : f32
    %1 = vector.broadcast %cst : f32 to vector<8x256xf32>
    %2 = arith.addf %0, %1 : vector<8x256xf32>
    %cst_1 = arith.constant 5.000000e-01 : f32
    %3 = vector.broadcast %cst_1 : f32 to vector<8x256xf32>
    %4 = arith.mulf %2, %3 : vector<8x256xf32>
    %c0_2 = arith.constant 0 : index
    %c0_3 = arith.constant 0 : index
    %5 = vector.load %arg2[%c0_2, %c0_3] : memref<8x256xf32, #tpu.memory_space<vmem>>, vector<8x256xf32>
    tpu.vector_store %arg2[%c0_2, %c0_3], %4 {strides = array<i32>} : memref<8x256xf32, #tpu.memory_space<vmem>>, vector<8x256xf32>,
    return
  }
  func.func @transform_0(%arg0: i32) -> (i32, i32) {
    %c0_i32 = arith.constant 0 : i32
    %c0_i32_0 = arith.constant 0 : i32
    return %arg0, %c0_i32 : i32, i32
  }
  func.func @transform_1(%arg0: i32) -> (i32, i32) {
    %c0_i32 = arith.constant 0 : i32
    %c0_i32_0 = arith.constant 0 : i32
    return %arg0, %c0_i32 : i32, i32
  }
}

</mosaic_0001>

<bundles_post_ra>
// kernel: tpu_custom_call.1
= control target key start
LH: loop header
LB: loop body
LE: loop exit
PB: predicated region body
PF: predicated region fallthrough
CT: control target
= control target key end

     0   :  { %6 = vsyncpa [#allocation3], 0  ;;  %s130_s0 = inlined_call_operand.hbm [shape: f32[8,256], index: 0, kind: input, shape index: {}]   ;;  %s131_s1 = inlined_call_operand.hbm [shape: f32[8,256], index: 1, kind: output, shape index: {}]  }
   0x1   :  { %7 = vsyncpa [#allocation4], 0  ;;  %s94_s6 = smov [#allocation2]   ;;  %s46_s10 = scalar_lea.hbm %s130_s0, 256 }
   0x2   :  { %s14_s7 = sshll.u32 %s94_s6, 4  ;;  %p47_p0 = scmp.ne.s32.totalorder %s130_s0, %s46_s10  ;;  %s15_s7 = int_to_ptr.vmem [resolvable:$true] %s14_s7 }
   0x3   :  { %p50_p1 = scmp.lt.u32.totalorder %s46_s10, %s130_s0 }
   0x5   :  { %p52_p2 = pnand %p50_p1, %p47_p0 }
   0x7   :  { %55 = shalt.err (!%p52_p2)
}
   0x8   :  { %s56_s15 = scalar_lea.vmem %s15_s7, 256  ;;  %p61_p4 = scmp.lt.s32.totalorder %s15_s7, %s15_s7 }
   0x9   :  { %p57_p3 = scmp.ne.s32.totalorder %s15_s7, %s56_s15  ;;  %p62_p5 = scmp.lt.s32.totalorder %s56_s15, %s56_s15 }
   0xb   :  { %p63_p6 = por %p62_p5, %p61_p4 }
   0xd   :  { %p64_p7 = pnand %p63_p6, %p57_p3 }
   0xf   :  { %67 = shalt.err (!%p64_p7)
}
  0x10   :  { %17 = dma.hbm_to_vmem [thread:$0]  %s130_s0, 256, %s15_s7, [#allocation3]  }
  0x11   :  { %90 = dma.done.wait [#allocation3], 256  }
  0x12   :  { %91 = vsyncadd [#allocation3], 4294967040  ;;  %v21_v0 = vld [vmem:[#allocation2] sm:$0xff]  ;;  %v22_v1 = vld [vmem:[#allocation2 + $0x8] sm:$0xff]  ;;  %s95_s18 = smov [#allocation5]  }
  0x13   :  { %s35_s19 = sshll.u32 %s95_s18, 4  ;;  %v23_v2 = vadd.f32 1.0, %v21_v0  ;;  %v24_v3 = vadd.f32 1.0, %v22_v1  ;;  %s36_s19 = int_to_ptr.vmem [resolvable:$true] %s35_s19 }
  0x14   :  { %s68_s20 = scalar_lea.vmem %s36_s19, 256  ;;  %p73_p9 = scmp.lt.s32.totalorder %s36_s19, %s36_s19 }
  0x15   :  { %v25_v4 = vmul.f32 0.5, %v23_v2  ;;  %v26_v5 = vmul.f32 0.5, %v24_v3  ;;  %p69_p8 = scmp.ne.s32.totalorder %s36_s19, %s68_s20  ;;  %p74_p10 = scmp.lt.s32.totalorder %s68_s20, %s68_s20 }
  0x17   :  { %27 = vst [vmem:[#allocation5] sm:$0xff] %v25_v4  ;;  %28 = vst [vmem:[#allocation5 + $0x8] sm:$0xff] %v26_v5  ;;  %p75_p11 = por %p74_p10, %p73_p9 }
  0x19   :  { %p76_p12 = pnand %p75_p11, %p69_p8 }
  0x1b   :  { %79 = shalt.err (!%p76_p12)
}
  0x1c   :  { %s80_s22 = scalar_lea.hbm %s131_s1, 256 }
  0x1d   :  { %p81_p13 = scmp.ne.s32.totalorder %s131_s1, %s80_s22  ;;  %p84_p0 = scmp.lt.u32.totalorder %s80_s22, %s131_s1 }
  0x1f   :  { %p86_p1 = pnand %p84_p0, %p81_p13 }
  0x21   :  { %89 = shalt.err (!%p86_p1)
}
  0x22   :  { %38 = dma.vmem_to_hbm [thread:$0]  %s36_s19, 256, %s131_s1, [#allocation4]  }
  0x23   :  { %92 = dma.done.wait [#allocation4], 256  }
  0x24   :  { %93 = vsyncadd [#allocation4], 4294967040 }
  0x25   :  { %42 = vsyncpa [#allocation3], 1 }
  0x26   :  { %43 = vsyncpa [#allocation4], 1 }

</bundles_post_ra>
